<compile_context>
chip_gen: v6e
topology: v6e:2x2x1
jax: 0.10.0
libtpu: 0.0.40
codegen_flags: <defaults>
</compile_context>

<pallas_src>
import functools

import jax
import jax.numpy as jnp
from jax.experimental import pallas as pl
from jax.experimental.pallas import tpu as pltpu

_LANE = 128


def _denormalize_kernel(x_ref, o_ref, *, inv_pow):
    x = x_ref[...]
    x = jnp.maximum(x, jnp.zeros((), x.dtype))        # torch.clip(grid, 0, None)
    if inv_pow == 1.0:
        y = x                                          # pow == 1: pure clip
    elif inv_pow == 0.5:
        y = jnp.sqrt(x)                                # pow == 2: single EUP op
    elif inv_pow == 0.25:
        y = jnp.sqrt(jnp.sqrt(x))                      # pow == 4
    elif inv_pow == 2.0:
        y = x * x                                      # pow == 0.5: pure VPU
    elif inv_pow == 3.0:
        y = x * x * x
    elif inv_pow == 4.0:
        x2 = x * x
        y = x2 * x2
    else:
        # General exponent: exp(c*log(x)) in f32 for accuracy.
        y = jnp.power(x.astype(jnp.float32), jnp.float32(inv_pow))
    o_ref[...] = y.astype(o_ref.dtype)


def _pick_block_rows(rows, row_bytes, target_tile_bytes, row_mult):
    """Rows per tile: ~target bytes, multiple of row_mult, >=4 blocks when big."""
    if rows <= row_mult or rows * row_bytes <= target_tile_bytes:
        return rows                                    # single full-dim block (always legal)
    by_bytes = max(row_mult, (target_tile_bytes // row_bytes) // row_mult * row_mult)
    # Keep >= ~4 grid steps so v7x's two TensorCores both get work.
    quarter = max(row_mult, (-(-rows // 4)) // row_mult * row_mult)
    return min(by_bytes, quarter, rows)


def denormalize(grid, pow=1, offset=0, scale=1, min_val=0, max_val=1,
                *, target_tile_bytes=4 * 1024 * 1024):
    """Pallas equivalent of Denormalizer(...).forward(grid)."""
    del offset, scale, min_val, max_val                # unused by the simplified forward()
    inv_pow = 1.0 / float(pow)                         # pow == 0 raises, matching Python/torch

    orig_shape = grid.shape
    orig_dtype = grid.dtype
    total = int(grid.size)
    if total == 0:
        return grid

    dtype_bytes = jnp.dtype(orig_dtype).itemsize
    # Sub-32-bit dtypes pack 2x/4x rows per sublane -> keep rows a multiple of 16/32.
    row_mult = max(8, 32 // dtype_bytes)

    # --- Choose a 2-D view (free reshape of a contiguous array; never pad). ---
    if total % _LANE == 0:
        cols = _LANE                                   # lane-dense hot path
    elif grid.ndim >= 2:
        cols = orig_shape[-1]                          # rare fallback: natural last dim
    else:
        cols = total                                   # tiny/odd 1-D input: one row
    rows = total // cols
    x2d = grid.reshape(rows, cols)

    row_bytes = cols * dtype_bytes
    # TODO(synk): a non-128-divisible last dim wider than ~1M elements would make even
    # an 8-row block exceed VMEM; such shapes do not occur for permFNO grids.
    block_rows = _pick_block_rows(rows, row_bytes, target_tile_bytes, row_mult)
    n_blocks = pl.cdiv(rows, block_rows)

    kernel = functools.partial(_denormalize_kernel, inv_pow=inv_pow)
    spec = pl.BlockSpec((block_rows, cols), lambda i: (i, 0))

    out2d = pl.pallas_call(
        kernel,
        out_shape=jax.ShapeDtypeStruct((rows, cols), orig_dtype),
        grid=(n_blocks,),
        in_specs=[spec],
        out_specs=spec,
        compiler_params=pltpu.CompilerParams(
            dimension_semantics=("parallel",),
            vmem_limit_bytes=40 * 1024 * 1024,
        ),
    )(x2d)

    return out2d.reshape(orig_shape)


if __name__ == "__main__":
    key = jax.random.PRNGKey(0)
    k1, k2, k3, k4 = jax.random.split(key, 4)

    # NCHW grid with values in ~[-1, 1] so the clip path is exercised.
    x = jax.random.normal(k1, (2, 4, 16, 16), dtype=jnp.float32)

    # pow=2 -> clip then sqrt (specialized EUP path).
    out = jax.block_until_ready(denormalize(x, pow=2))
    ref = jnp.sqrt(jnp.maximum(x, 0.0))
    assert out.shape == x.shape and out.dtype == x.dtype
    assert jnp.allclose(out, ref, atol=1e-6, rtol=1e-6)

    # pow=1 (default) -> pure clip, bit-exact.
    out1 = jax.block_until_ready(denormalize(x))
    assert jnp.array_equal(out1, jnp.maximum(x, 0.0))

    # pow=0.5 -> x*x (pure VPU path).
    outs = jax.block_until_ready(denormalize(x, pow=0.5))
    refs = jnp.square(jnp.maximum(x, 0.0))
    assert jnp.allclose(outs, refs, atol=1e-6, rtol=1e-6)

    # pow=3 -> general exp/log fallback (1/3 is not a specialized exponent).
    out3 = jax.block_until_ready(denormalize(x, pow=3))
    ref3 = jnp.power(jnp.maximum(x, 0.0), 1.0 / 3.0)
    assert jnp.allclose(out3, ref3, atol=1e-5, rtol=1e-5)

    # Element count not a multiple of 128 -> natural-shape fallback (no pad/slice copies).
    y = jax.random.normal(k2, (2, 3, 7, 5), dtype=jnp.float32)
    outy = jax.block_until_ready(denormalize(y, pow=2))
    refy = jnp.sqrt(jnp.maximum(y, 0.0))
    assert outy.shape == y.shape
    assert jnp.allclose(outy, refy, atol=1e-6, rtol=1e-6)

    # bf16 stays in bf16 on the fast path (no f32 upcast).
    xb = jax.random.normal(k3, (2, 4, 16, 16), dtype=jnp.bfloat16)
    outb = jax.block_until_ready(denormalize(xb, pow=2))
    refb = jnp.sqrt(jnp.maximum(xb, jnp.bfloat16(0)))
    assert outb.dtype == jnp.bfloat16
    assert jnp.allclose(outb.astype(jnp.float32), refb.astype(jnp.float32),
                        atol=1e-2, rtol=1e-2)

    # Force a multi-block pipeline with a ragged final row block (small tile budget).
    z = jax.random.normal(k4, (2, 4, 41, 128), dtype=jnp.float32)
    outz = jax.block_until_ready(denormalize(z, pow=2, target_tile_bytes=64 * 1024))
    refz = jnp.sqrt(jnp.maximum(z, 0.0))
    assert jnp.allclose(outz, refz, atol=1e-6, rtol=1e-6)

    print("KERNEL_OK")
</pallas_src>

<mosaic_0001>
module attributes {stable_mosaic.version = 11 : i64} {
  func.func @_denormalize_kernel(%arg0: i32, %arg1: memref<16x128xf32, #tpu.memory_space<vmem>>, %arg2: memref<16x128xf32, #tpu.memory_space<vmem>>) attributes {dimension_semantics = [#tpu.dimension_semantics<parallel>], iteration_bounds = array<i64: 1>, scalar_prefetch = 0 : i64, scratch_operands = 0 : i64, tpu.core_type = #tpu.core_type<tc>, window_params = [{transform_indices = @transform_0, window_bounds = array<i64: 16, 128>}, {transform_indices = @transform_1, window_bounds = array<i64: 16, 128>}]} {
    %c0 = arith.constant 0 : index
    %c0_0 = arith.constant 0 : index
    %0 = vector.load %arg1[%c0, %c0_0] : memref<16x128xf32, #tpu.memory_space<vmem>>, vector<16x128xf32>
    %cst = arith.constant 0.000000e+00 : f32
    %1 = vector.broadcast %cst : f32 to vector<16x128xf32>
    %2 = arith.maximumf %0, %1 : vector<16x128xf32>
    %3 = math.sqrt %2 : vector<16x128xf32>
    %c0_1 = arith.constant 0 : index
    %c0_2 = arith.constant 0 : index
    %4 = vector.load %arg2[%c0_1, %c0_2] : memref<16x128xf32, #tpu.memory_space<vmem>>, vector<16x128xf32>
    tpu.vector_store %arg2[%c0_1, %c0_2], %3 {strides = array<i32>} : memref<16x128xf32, #tpu.memory_space<vmem>>, vector<16x128xf32>,
    return
  }
  func.func @transform_0(%arg0: i32) -> (i32, i32) {
    %c0_i32 = arith.constant 0 : i32
    %c0_i32_0 = arith.constant 0 : i32
    return %arg0, %c0_i32 : i32, i32
  }
  func.func @transform_1(%arg0: i32) -> (i32, i32) {
    %c0_i32 = arith.constant 0 : i32
    %c0_i32_0 = arith.constant 0 : i32
    return %arg0, %c0_i32 : i32, i32
  }
}

</mosaic_0001>

<bundles_post_ra>
// kernel: tpu_custom_call.1
= control target key start
LH: loop header
LB: loop body
LE: loop exit
PB: predicated region body
PF: predicated region fallthrough
CT: control target
= control target key end

     0   :  { %6 = vsyncpa [#allocation3], 0  ;;  %s138_s0 = inlined_call_operand.hbm [shape: f32[16,128], index: 0, kind: input, shape index: {}]   ;;  %s139_s1 = inlined_call_operand.hbm [shape: f32[16,128], index: 1, kind: output, shape index: {}]  }
   0x1   :  { %7 = vsyncpa [#allocation4], 0  ;;  %s112_s6 = smov [#allocation2]  }
   0x2   :  { %s13_s7 = sshll.u32 %s112_s6, 4  ;;  %s14_s7 = int_to_ptr.vmem [resolvable:$true] %s13_s7 }
   0x3   :  { %s76_s8 = scalar_lea.vmem %s14_s7, 256  ;;  %p81_p1 = scmp.lt.s32.totalorder %s14_s7, %s14_s7 }
   0x4   :  { %p77_p0 = scmp.ne.s32.totalorder %s14_s7, %s76_s8  ;;  %p82_p2 = scmp.lt.s32.totalorder %s76_s8, %s76_s8 }
   0x6   :  { %p83_p3 = por %p82_p2, %p81_p1 }
   0x8   :  { %p84_p4 = pnand %p83_p3, %p77_p0 }
   0xa   :  { %87 = shalt.err (!%p84_p4)
}
   0xb   :  { %s113_s9 = smov 128   ;;  %s114_s10 = smov 8  }
   0xc   :  { %19 = dma.hbm_to_vmem [thread:$0]  %s138_s0, 256, %s14_s7, [#allocation3], %s113_s9, %s113_s9, %s114_s10  }
   0xd   :  { %108 = dma.done.wait [#allocation3], 256  }
   0xe   :  { %109 = vsyncadd [#allocation3], 4294967040  ;;  %v23_v0 = vld [vmem:[#allocation2] sm:$0xff]  ;;  %v24_v1 = vld [vmem:[#allocation2 + $0x8] sm:$0xff]  ;;  %s115_s13 = smov [#allocation5]  }
   0xf   :  { %v25_v2 = vmax.f32 %v23_v0, 0.0  ;;  %v26_v3 = vmax.f32 %v24_v1, 0.0  ;;  %s48_s14 = sshll.u32 %s115_s13, 4  ;;  %s49_s14 = int_to_ptr.vmem [resolvable:$true] %s48_s14 }
  0x10   :  { %s88_s0 = scalar_lea.vmem %s49_s14, 256  ;;  %p93_p6 = scmp.lt.s32.totalorder %s49_s14, %s49_s14 }
  0x11   :  { %64 = vrsqrt.f32 %v25_v2  ;;  %vm29_vm0 = vcmp.eq.f32.partialorder %v25_v2, inf  ;;  %v32_v5 = vand.u32 2147483648, %v25_v2  ;;  %vm31_vm1 = vcmp.eq.f32.partialorder %v25_v2, 0.0  ;;  %p89_p5 = scmp.ne.s32.totalorder %s49_s14, %s88_s0  ;;  %p94_p7 = scmp.lt.s32.totalorder %s88_s0, %s88_s0 }
  0x12   :  { %66 = vrsqrt.f32 %v26_v3  ;;  %vm36_vm2 = vcmp.eq.f32.partialorder %v26_v3, inf  ;;  %v39_v8 = vand.u32 2147483648, %v26_v3  ;;  %vm38_vm3 = vcmp.eq.f32.partialorder %v26_v3, 0.0 }
  0x13   :  { %p95_p8 = por %p94_p7, %p93_p6 }
  0x15   :  { %p96_p9 = pnand %p95_p8, %p89_p5 }
  0x1e   :  { %v65_v4 = vpop.eup %64 }
  0x1f   :  { %v67_v6 = vpop.eup %66  ;;  %v28_v7 = vmul.f32 %v65_v4, %v25_v2 }
  0x20   :  { %v35_v9 = vmul.f32 %v67_v6, %v26_v3 }
  0x21   :  { %v30_v10 = vsel %vm29_vm0, %v25_v2, %v28_v7 }
  0x22   :  { %v33_v11 = vsel %vm31_vm1, %v32_v5, %v30_v10  ;;  %v37_v12 = vsel %vm36_vm2, %v26_v3, %v35_v9 }
  0x23   :  { %41 = vst [vmem:[#allocation5] sm:$0xff] %v33_v11  ;;  %v40_v13 = vsel %vm38_vm3, %v39_v8, %v37_v12 }
  0x24   :  { %42 = vst [vmem:[#allocation5 + $0x8] sm:$0xff] %v40_v13 }
  0x25   :  { %99 = shalt.err (!%p96_p9)
}
  0x26   :  { %54 = dma.vmem_to_hbm [thread:$0]  %s49_s14, 256, %s139_s1, [#allocation4], %s113_s9, %s113_s9, %s114_s10  }
  0x27   :  { %110 = dma.done.wait [#allocation4], 256  }
  0x28   :  { %111 = vsyncadd [#allocation4], 4294967040 }
  0x29   :  { %58 = vsyncpa [#allocation3], 1 }
  0x2a   :  { %59 = vsyncpa [#allocation4], 1 }

</bundles_post_ra>
